<compile_context>
chip_gen: v5e
topology: v5e:2x2
jax: 0.10.0
libtpu: 0.0.40
codegen_flags: <defaults>
</compile_context>

<pallas_src>
import functools

import jax
import jax.numpy as jnp
from jax.experimental import pallas as pl
from jax.experimental.pallas import tpu as pltpu


_SUBLANE_FOR_ITEMSIZE = {4: 8, 2: 16, 1: 32}


def _cdiv(a, b):
    return -(-a // b)


def _vmem_capacity_bytes():
    try:
        info = pltpu.get_tpu_info()
        cap = getattr(info, "vmem_capacity_bytes", None)
        if cap:
            return int(cap)
    except Exception:
        pass
    return 64 << 20  # conservative fallback: v7x per-TensorCore VMEM


def _budgets():
    """(per-step tile budget, vmem_limit ceiling) for this TPU generation."""
    cap = _vmem_capacity_bytes()
    if cap <= (64 << 20):          # v7x: 64 MiB per TensorCore
        tile_budget = 24 << 20
        limit_cap = 56 << 20
    else:                          # v5e / v6e: 128 MiB
        tile_budget = 48 << 20
        limit_cap = 104 << 20
    return tile_budget, min(limit_cap, cap - (8 << 20))


def _softmax_rows(x, approx):
    # numerically-stable softmax over the last (lane) axis, f32 on VPU/EUP
    m = jnp.max(x, axis=-1, keepdims=True)
    e = jnp.exp(x - m)
    s = jnp.sum(e, axis=-1, keepdims=True)
    return e * pl.reciprocal(s, approx=approx)


def _distill_mse_kernel(ys_ref, yt_ref, out_ref, *, n_rows, tile_n, needs_mask, approx):
    ys = ys_ref[...].astype(jnp.float32)
    yt = yt_ref[...].astype(jnp.float32)

    diff = _softmax_rows(ys, approx) - _softmax_rows(yt, approx)

    if needs_mask:
        # Single select is sufficient: garbage/NaN in padded tail rows cannot
        # leak through the per-element where(), and softmax is row-local so
        # padded rows never touch valid rows.
        row = jax.lax.broadcasted_iota(jnp.int32, diff.shape, 0)
        valid = (pl.program_id(0) * tile_n + row) < n_rows
        diff = jnp.where(valid, diff, 0.0)

    partial = jnp.sum(diff * diff)

    # Lane-dense (8,128) output tile: replicate the scalar; the extra 1/(8*128)
    # factor is folded into the final scaling outside the kernel.
    out_ref[...] = jnp.broadcast_to(partial.astype(jnp.float32), (8, 128))


def _choose_tile_n(n, c, itemsize, sublane, tile_budget):
    # 2 inputs x 2 pipeline buffers per step: 4 * tile_n * c * itemsize <= budget
    max_rows = max(sublane, tile_budget // (4 * c * itemsize))
    tile = max(sublane, (max_rows // sublane) * sublane)
    if tile >= n:
        if n >= 2 * sublane:
            # Split into >=2 row blocks so a 2-TensorCore part (v7x) can shard
            # the "parallel" grid axis across both cores.
            return _cdiv(_cdiv(n, 2), sublane) * sublane
        return n  # single block covering all rows (block dim == full dim is legal)
    return tile


def distill_mse(y_s, y_t, *, tile_n=None, approx_reciprocal=True):
    """mean((softmax(y_s, -1) - softmax(y_t, -1))**2)  ==  DistillMSE.forward."""
    assert y_s.shape == y_t.shape and y_s.ndim == 2
    assert y_s.dtype == y_t.dtype
    n, c = y_s.shape
    itemsize = jnp.dtype(y_s.dtype).itemsize
    sublane = _SUBLANE_FOR_ITEMSIZE.get(itemsize, 8)

    tile_budget, limit_cap = _budgets()
    if tile_n is None:
        tile_n = _choose_tile_n(n, c, itemsize, sublane, tile_budget)
    tile_n = min(int(tile_n), n)
    assert tile_n == n or tile_n % sublane == 0, (
        f"tile_n must be a multiple of {sublane} (or == N)")

    num_blocks = _cdiv(n, tile_n)
    needs_mask = (n % tile_n) != 0
    # Each block replicates its scalar over 8*128 lanes -> fold 1/1024 in here.
    scale = 1.0 / (float(n) * float(c) * (8 * 128))

    kernel = functools.partial(
        _distill_mse_kernel,
        n_rows=n, tile_n=tile_n, needs_mask=needs_mask, approx=approx_reciprocal)

    # 2 inputs x 2 pipeline buffers + 2 output tiles, plus headroom; clamped to
    # this generation's safe VMEM ceiling.
    buf_bytes = 4 * tile_n * c * itemsize + 2 * 8 * 128 * 4
    vmem_limit = int(min(limit_cap, max(buf_bytes + (4 << 20), 16 << 20)))

    partials = pl.pallas_call(
        kernel,
        out_shape=jax.ShapeDtypeStruct((8, 128 * num_blocks), jnp.float32),
        grid=(num_blocks,),
        in_specs=[
            pl.BlockSpec((tile_n, c), lambda i: (i, 0)),
            pl.BlockSpec((tile_n, c), lambda i: (i, 0)),
        ],
        out_specs=pl.BlockSpec((8, 128), lambda i: (0, i)),
        compiler_params=pltpu.CompilerParams(
            dimension_semantics=("parallel",),
            vmem_limit_bytes=vmem_limit,
        ),
    )(y_s, y_t)

    # Tiny reduction of per-block partials + global mean scaling outside the kernel.
    return jnp.sum(partials) * scale


if __name__ == "__main__":
    key = jax.random.PRNGKey(0)
    k1, k2 = jax.random.split(key)

    # Small distillation-style logits: batch of 100 examples, 32 classes.
    # Auto-tiling splits N=100 into 2 row blocks (tile_n=56) -> exercises the
    # multi-block "parallel" grid AND the masked tail block.
    N, C = 100, 32
    y_s = jax.random.normal(k1, (N, C), dtype=jnp.float32)
    y_t = jax.random.normal(k2, (N, C), dtype=jnp.float32)

    ref = jnp.mean((jax.nn.softmax(y_s, axis=1) - jax.nn.softmax(y_t, axis=1)) ** 2)

    # 1) Default path: byte-budgeted auto tile, approximate EUP reciprocal.
    loss = distill_mse(y_s, y_t)
    jax.block_until_ready(loss)
    assert jnp.allclose(loss, ref, atol=1e-5, rtol=1e-3), (loss, ref)

    # 2) Explicit small tile + exact reciprocal: many blocks + masked tail, tight tol.
    loss_exact = distill_mse(y_s, y_t, tile_n=16, approx_reciprocal=False)
    jax.block_until_ready(loss_exact)
    assert jnp.allclose(loss_exact, ref, atol=1e-6, rtol=1e-4), (loss_exact, ref)

    print("KERNEL_OK")
</pallas_src>

<mosaic_0001>
module attributes {stable_mosaic.version = 11 : i64} {
  func.func @_distill_mse_kernel(%arg0: i32, %arg1: memref<56x32xf32, #tpu.memory_space<vmem>>, %arg2: memref<56x32xf32, #tpu.memory_space<vmem>>, %arg3: memref<8x128xf32, #tpu.memory_space<vmem>>) attributes {dimension_semantics = [#tpu.dimension_semantics<parallel>], iteration_bounds = array<i64: 2>, scalar_prefetch = 0 : i64, scratch_operands = 0 : i64, tpu.core_type = #tpu.core_type<tc>, window_params = [{transform_indices = @transform_0, window_bounds = array<i64: 56, 32>}, {transform_indices = @transform_1, window_bounds = array<i64: 56, 32>}, {transform_indices = @transform_2, window_bounds = array<i64: 8, 128>}]} {
    %c0 = arith.constant 0 : index
    %c0_0 = arith.constant 0 : index
    %0 = vector.load %arg1[%c0, %c0_0] : memref<56x32xf32, #tpu.memory_space<vmem>>, vector<56x32xf32>
    %c0_1 = arith.constant 0 : index
    %c0_2 = arith.constant 0 : index
    %1 = vector.load %arg2[%c0_1, %c0_2] : memref<56x32xf32, #tpu.memory_space<vmem>>, vector<56x32xf32>
    %cst = arith.constant dense<0xFF800000> : vector<56xf32>
    %2 = vector.multi_reduction <maximumf>, %0, %cst [1] : vector<56x32xf32> to vector<56xf32>
    %3 = vector.shape_cast %2 : vector<56xf32> to vector<56x1xf32>
    %4 = vector.broadcast %3 : vector<56x1xf32> to vector<56x32xf32>
    %5 = arith.subf %0, %4 : vector<56x32xf32>
    %6 = math.exp %5 : vector<56x32xf32>
    %cst_3 = arith.constant dense<0.000000e+00> : vector<56xf32>
    %7 = vector.multi_reduction <add>, %6, %cst_3 [1] : vector<56x32xf32> to vector<56xf32>
    %8 = vector.shape_cast %7 : vector<56xf32> to vector<56x1xf32>
    %9 = tpu.reciprocal %8 {approx = true} : vector<56x1xf32> -> vector<56x1xf32>
    %10 = vector.broadcast %9 : vector<56x1xf32> to vector<56x32xf32>
    %11 = arith.mulf %6, %10 : vector<56x32xf32>
    %cst_4 = arith.constant dense<0xFF800000> : vector<56xf32>
    %12 = vector.multi_reduction <maximumf>, %1, %cst_4 [1] : vector<56x32xf32> to vector<56xf32>
    %13 = vector.shape_cast %12 : vector<56xf32> to vector<56x1xf32>
    %14 = vector.broadcast %13 : vector<56x1xf32> to vector<56x32xf32>
    %15 = arith.subf %1, %14 : vector<56x32xf32>
    %16 = math.exp %15 : vector<56x32xf32>
    %cst_5 = arith.constant dense<0.000000e+00> : vector<56xf32>
    %17 = vector.multi_reduction <add>, %16, %cst_5 [1] : vector<56x32xf32> to vector<56xf32>
    %18 = vector.shape_cast %17 : vector<56xf32> to vector<56x1xf32>
    %19 = tpu.reciprocal %18 {approx = true} : vector<56x1xf32> -> vector<56x1xf32>
    %20 = vector.broadcast %19 : vector<56x1xf32> to vector<56x32xf32>
    %21 = arith.mulf %16, %20 : vector<56x32xf32>
    %22 = arith.subf %11, %21 : vector<56x32xf32>
    %23 = tpu.iota {dimensions = array<i32: 0>} : vector<56x32xi32>
    %c56_i32 = arith.constant 56 : i32
    %24 = arith.muli %arg0, %c56_i32 : i32
    %25 = vector.broadcast %24 : i32 to vector<56x32xi32>
    %26 = arith.addi %25, %23 : vector<56x32xi32>
    %c100_i32 = arith.constant 100 : i32
    %27 = vector.broadcast %c100_i32 : i32 to vector<56x32xi32>
    %28 = arith.cmpi slt, %26, %27 : vector<56x32xi32>
    %cst_6 = arith.constant 0.000000e+00 : f32
    %29 = vector.broadcast %cst_6 : f32 to vector<56x32xf32>
    %30 = arith.select %28, %22, %29 : vector<56x32xi1>, vector<56x32xf32>
    %31 = arith.mulf %30, %30 : vector<56x32xf32>
    %32 = vector.shape_cast %31 : vector<56x32xf32> to vector<1x56x32xf32>
    %cst_7 = arith.constant dense<0.000000e+00> : vector<1xf32>
    %33 = vector.multi_reduction <add>, %32, %cst_7 [1, 2] : vector<1x56x32xf32> to vector<1xf32>
    %34 = vector.shape_cast %33 : vector<1xf32> to vector<1x1x1xf32>
    %35 = vector.extract %34[0, 0, 0] : f32 from vector<1x1x1xf32>
    %36 = vector.broadcast %35 : f32 to vector<8x128xf32>
    %c0_8 = arith.constant 0 : index
    %c0_9 = arith.constant 0 : index
    %37 = vector.load %arg3[%c0_8, %c0_9] : memref<8x128xf32, #tpu.memory_space<vmem>>, vector<8x128xf32>
    tpu.vector_store %arg3[%c0_8, %c0_9], %36 {strides = array<i32>} : memref<8x128xf32, #tpu.memory_space<vmem>>, vector<8x128xf32>,
    return
  }
  func.func @transform_0(%arg0: i32) -> (i32, i32) {
    %c0_i32 = arith.constant 0 : i32
    %c0_i32_0 = arith.constant 0 : i32
    return %arg0, %c0_i32 : i32, i32
  }
  func.func @transform_1(%arg0: i32) -> (i32, i32) {
    %c0_i32 = arith.constant 0 : i32
    %c0_i32_0 = arith.constant 0 : i32
    return %arg0, %c0_i32 : i32, i32
  }
  func.func @transform_2(%arg0: i32) -> (i32, i32) {
    %c0_i32 = arith.constant 0 : i32
    %c0_i32_0 = arith.constant 0 : i32
    return %c0_i32, %arg0 : i32, i32
  }
}

</mosaic_0001>

<bundles_post_ra>
// kernel: tpu_custom_call.1
= control target key start
LH: loop header
LB: loop body
LE: loop exit
PB: predicated region body
PF: predicated region fallthrough
CT: control target
= control target key end

     0   :  { %7 = vsyncpa [#allocation3], 0  ;;  %s962_s0 = inlined_call_operand.vmem [shape: f32[100,32], index: 0, kind: input, shape index: {}]   ;;  %s963_s1 = inlined_call_operand.vmem [shape: f32[100,32], index: 1, kind: input, shape index: {}]   ;;  %s964_s2 = inlined_call_operand.hbm [shape: f32[8,256], index: 2, kind: output, shape index: {}]  }
   0x1   :  { %9 = vsyncpa [#allocation3 + $0x1], 0  ;;  %s718_s9 = smov 0   ;;  %s720_s10 = smov 0  }
   0x2   :  { %s722_s11 = smov 0   ;;  %s724_s12 = smov 0  }
   0x3 LB: > { %s739_s13 = sadd.s32 4294967295, %s701_s12   ;;  %s531_s14 = sadd.s32 4294967294, %s701_s12   ;;  %s701_s12 = sphi %s724_s12, %s970_s12   ;;  %s697_s11 = sphi %s722_s11, %s969_s11   ;;  %s693_s10 = sphi %s720_s10, %s968_s10   ;;  %s689_s9 = sphi %s718_s9, %s967_s9  }
   0x4   : > { %s743_s15 = sadd.s32 1, %s701_s12   ;;  %s74_s16 = sadd.s32 1, %s697_s11 }
   0x5   : > { %s71_s17 = ssub.s32 %s701_s12, %s743_s15  ;;  %p84_p0 = scmp.ne.s32.totalorder %s697_s11, %s693_s10 }
   0x6   : > { %p72_p1 = scmp.eq.s32.totalorder %s71_s17, 0  ;;  %p85_p2 = scmp.eq.s32.totalorder %s739_s13, 1 }
   0x7   : > { %p90_p3 = scmp.ne.s32.totalorder %s693_s10, %s689_s9  ;;  %p91_p4 = scmp.eq.s32.totalorder %s531_s14, 1 }
   0x8   : > { %s754_s18 = scalar_select %p72_p1, %s697_s11, %s74_s16  }
   0x9   : > { %p756_p5 = por %p85_p2, %p84_p0  ;;  %p760_p6 = por %p91_p4, %p90_p3 }
   0xa   : > { %p534_p7 = scmp.ge.s32.totalorder %s701_s12, 1  ;;  %p143_p8 = scmp.lt.s32.totalorder %s701_s12, 3 }
   0xc   : > { %p144_p9 = pnand %p534_p7, %p143_p8 }
   0xd   : > { %s178_s21 = smul.u32 (!%p144_p9), 7, %s739_s13  ;;  %s175_s30 = sand.u32 (!%p144_p9), 1, %s693_s10  }
   0xe   : > { %147 = sbr.rel (%p144_p9) target bundleno = 509 (0x1fd), region = 28  ;;  %s535_s3 = sshll.u32 (!%p144_p9), %s175_s30, 3 }
   0xf   : > { %p183_p10 = scmp.lt.s32.totalorder (!%p144_p9), %s178_s21, 12  ;;  %s390_s29 = smul.u32 (!%p144_p9), 56, %s739_s13 }
  0x10   : > { %s539_s4 = sshll.u32 (!%p144_p9), %s739_s13, 3  ;;  %s177_s8 = scalar_lea.vmem (!%p144_p9), [#allocation2], %s535_s3 }
  0x11   : > { %s455_s7 = scalar_lea.hbm (!%p144_p9), %s964_s2, %s539_s4  ;;  %s457_s14 = sshll.u32 (!%p144_p9), %s177_s8, 4  ;;  %s458_s14 = int_to_ptr.vmem [resolvable:$true] %s457_s14 }
  0x12   : > { %s459_s16 = sshll.u32 (!%p144_p9), %s455_s7, 4  ;;  %s460_s16 = int_to_ptr.hbm [resolvable:$true] %s459_s16 }
  0x13   : > { %s972_s21 = smov (!%p183_p10, %s178_s21), 12  ;;  %vm220_vm0 = vcmask 261120  }
  0x14   : > { %s536_s22 = sshll.u32 %s972_s21, 3  ;;  %s445_s21 = scalar_lea.sflag [#allocation3], %s175_s30 }
  0x15   : > { %s770_s25 = scalar_lea.vmem %s963_s1, %s536_s22  ;;  %s775_s28 = scalar_lea.vmem %s962_s0, %s536_s22 }
  0x16   : > { %v213_v0 = vld [vmem:[%s770_s25] sm:$0xff]  ;;  %v779_v1 = vld [vmem:[%s775_s28 + $0x10] sm:$0xff]  ;;  %v214_v6 = vld [vmem:[%s770_s25 + $0x8] sm:$0xff]  ;;  %s653_s22 = sshra.s32 %s460_s16, 4  ;;  %s654_s22 = int_to_ptr.hbm [resolvable:$true] %s653_s22 }
  0x17   : > { %v206_v2 = vld [vmem:[%s775_s28] sm:$0xff]  ;;  %v298_v3 = vsel %vm220_vm0, %v213_v0, -inf  ;;  %v227_v4 = vsel %vm220_vm0, %v779_v1, -inf  ;;  %v215_v7 = vld [vmem:[%s770_s25 + $0x10] sm:$0xff]  ;;  %v207_v8 = vld [vmem:[%s775_s28 + $0x8] sm:$0xff]  ;;  %v301_v9 = vsel %vm220_vm0, %v214_v6, -inf  ;;  %p660_p0 = scmp.lt.s32.totalorder %s654_s22, %s964_s2 }
  0x18   : > { %v221_v5 = vsel %vm220_vm0, %v206_v2, -inf  ;;  %299 = vmax.xlane.f32.xlu1 %v298_v3  ;;  %228 = vmax.xlane.f32.xlu2 %v227_v4  ;;  %v304_v10 = vsel %vm220_vm0, %v215_v7, -inf  ;;  %v224_v11 = vsel %vm220_vm0, %v207_v8, -inf  ;;  %v210_v12 = vld [vmem:[%s775_s28 + $0x20] sm:$0xff]  ;;  %v794_v13 = vld [vmem:[%s770_s25 + $0x18] sm:$0xff]  ;;  %v802_v18 = vld [vmem:[%s770_s25 + $0x28] sm:$0xff] }
  0x19   : > { %222 = vmax.xlane.f32.xlu0 %v221_v5  ;;  %v209_v14 = vld [vmem:[%s775_s28 + $0x18] sm:$0xff]  ;;  %v233_v15 = vsel %vm220_vm0, %v210_v12, -inf  ;;  %v307_v16 = vsel %vm220_vm0, %v794_v13, -inf  ;;  %v805_v19 = vld [vmem:[%s775_s28 + $0x28] sm:$0xff]  ;;  %v808_v20 = vld [vmem:[%s770_s25 + $0x20] sm:$0xff]  ;;  %v313_v21 = vsel %vm220_vm0, %v802_v18, -inf }
  0x1a   : > { %v230_v17 = vsel %vm220_vm0, %v209_v14, -inf  ;;  %v236_v22 = vsel %vm220_vm0, %v805_v19, -inf  ;;  %v310_v23 = vsel %vm220_vm0, %v808_v20, -inf  ;;  %v817_v24 = vld [vmem:[%s770_s25 + $0x30] sm:$0xff]  ;;  %s655_s23 = scalar_lea.hbm %s654_s22, 8  ;;  %s659_s25 = scalar_lea.hbm %s964_s2, 16 }
  0x1b   : > { %v820_v25 = vld [vmem:[%s775_s28 + $0x30] sm:$0xff]  ;;  %v316_v26 = vsel %vm220_vm0, %v817_v24, -inf  ;;  %p656_p11 = scmp.ne.s32.totalorder %s654_s22, %s655_s23  ;;  %p661_p1 = scmp.lt.s32.totalorder %s659_s25, %s655_s23 }
  0x1c   : > { %v239_v27 = vsel %vm220_vm0, %v820_v25, -inf }
  0x1d   : > { %p657_p12 = pnand %p656_p11, %p756_p5  ;;  %p662_p2 = por %p661_p1, %p660_p0 }
  0x1f   : > { %p658_p13 = pneg %p657_p12 }
  0x20   : > { %302 = vmax.xlane.f32.xlu1 %v301_v9  ;;  %305 = vmax.xlane.f32.xlu2 %v304_v10 }
  0x21   : > { %225 = vmax.xlane.f32.xlu0 %v224_v11  ;;  %p663_p3 = pnand %p662_p2, %p658_p13 }
  0x28   : > { %234 = vmax.xlane.f32.xlu2 %v233_v15  ;;  %308 = vmax.xlane.f32.xlu1 %v307_v16 }
  0x29   : > { %231 = vmax.xlane.f32.xlu0 %v230_v17 }
  0x30   : > { %314 = vmax.xlane.f32.xlu2 %v313_v21  ;;  %237 = vmax.xlane.f32.xlu1 %v236_v22 }
  0x31   : > { %311 = vmax.xlane.f32.xlu0 %v310_v23 }
  0x38   : > { %317 = vmax.xlane.f32.xlu1 %v316_v26 }
  0x39   : > { %240 = vmax.xlane.f32.xlu0 %v239_v27 }
  0x8b   : > { %v300_v28 = vpop.xlane.xlu1 %299  ;;  %v229_v29 = vpop.xlane.xlu2 %228 }
  0x8c   : > { %v319_v30 = vsub.f32 %v213_v0, %v300_v28  ;;  %v223_v31 = vpop.xlane.xlu0 %222  ;;  %v244_v44 = vsub.f32 %v779_v1, %v229_v29 }
  0x8d   : > { %v242_v32 = vsub.f32 %v206_v2, %v223_v31 }
  0x8e   : > { %v326_v33 = vmul.f32 1.442695, %v319_v30  ;;  %v253_v49 = vmul.f32 1.442695, %v244_v44 }
  0x8f   : > { %v249_v34 = vmul.f32 1.442695, %v242_v32 }
  0x90   : > { %583 = vpow2.f32 %v326_v33 }
  0x91   : > { %585 = vpow2.f32 %v249_v34 }
  0x93   : > { %v303_v35 = vpop.xlane.xlu1 %302  ;;  %v306_v36 = vpop.xlane.xlu2 %305 }
  0x94   : > { %v320_v37 = vsub.f32 %v214_v6, %v303_v35  ;;  %v321_v38 = vsub.f32 %v215_v7, %v306_v36  ;;  %v226_v39 = vpop.xlane.xlu0 %225 }
  0x95   : > { %v243_v40 = vsub.f32 %v207_v8, %v226_v39  ;;  %v382_v39 = vlaneseq }
  0x96   : > { %v826_v41 = vpop.eup %583  ;;  %v328_v42 = vmul.f32 1.442695, %v320_v37  ;;  %v330_v43 = vmul.f32 1.442695, %v321_v38 }
  0x97   : > { %v251_v45 = vmul.f32 1.442695, %v243_v40  ;;  %v340_v46 = vsel %vm220_vm0, %v826_v41, 0.0  ;;  %v831_v47 = vpop.eup %585  ;;  %v889_v44 = vshrl.u32 %v382_v39, 7 }
  0x98   : > { %587 = vpow2.f32 %v328_v42  ;;  %341 = vadd.xlane.f32.xlu1 %v340_v46  ;;  %v263_v48 = vsel %vm220_vm0, %v831_v47, 0.0 }
  0x99   : > { %589 = vpow2.f32 %v330_v43  ;;  %264 = vadd.xlane.f32.xlu2 %v263_v48  ;;  %v384_v48 = vadd.s32 8, %v889_v44 }
  0x9a   : > { %591 = vpow2.f32 %v251_v45 }
  0x9b   : > { %v235_v50 = vpop.xlane.xlu2 %234  ;;  %v309_v51 = vpop.xlane.xlu1 %308  ;;  %593 = vpow2.f32 %v253_v49 }
  0x9c   : > { %v246_v52 = vsub.f32 %v210_v12, %v235_v50  ;;  %v232_v53 = vpop.xlane.xlu0 %231  ;;  %v322_v57 = vsub.f32 %v794_v13, %v309_v51 }
  0x9d   : > { %v245_v54 = vsub.f32 %v209_v14, %v232_v53 }
  0x9e   : > { %v835_v55 = vpop.eup %587  ;;  %v257_v56 = vmul.f32 1.442695, %v246_v52  ;;  %v332_v0 = vmul.f32 1.442695, %v322_v57 }
  0x9f   : > { %v838_v58 = vpop.eup %589  ;;  %v255_v59 = vmul.f32 1.442695, %v245_v54  ;;  %v343_v60 = vsel %vm220_vm0, %v835_v55, 0.0  ;;  %v893_v54 = vstv %s390_s29 }
  0xa0   : > { %v842_v61 = vpop.eup %591  ;;  %595 = vpow2.f32 %v257_v56  ;;  %v346_v62 = vsel %vm220_vm0, %v838_v58, 0.0 }
  0xa1   : > { %597 = vpow2.f32 %v255_v59  ;;  %347 = vadd.xlane.f32.xlu1 %v346_v62  ;;  %v266_v63 = vsel %vm220_vm0, %v842_v61, 0.0  ;;  %344 = vadd.xlane.f32.xlu2 %v343_v60  ;;  %v849_v5 = vpop.eup %593  ;;  %v385_v59 = vadd.s32 16, %v889_v44  ;;  %v393_v60 = vadd.s32 %v893_v54, %v384_v48 }
  0xa2   : > { %267 = vadd.xlane.f32.xlu0 %v266_v63  ;;  %599 = vpow2.f32 %v332_v0  ;;  %v269_v14 = vsel %vm220_vm0, %v849_v5, 0.0  ;;  %v386_v63 = vadd.s32 24, %v889_v44 }
  0xa3   : > { %v315_v1 = vpop.xlane.xlu2 %314  ;;  %v238_v2 = vpop.xlane.xlu1 %237  ;;  %vm400_vm1 = vcmp.lt.s32.totalorder %v393_v60, 100 }
  0xa4   : > { %v324_v3 = vsub.f32 %v802_v18, %v315_v1  ;;  %v312_v4 = vpop.xlane.xlu0 %311  ;;  %v247_v9 = vsub.f32 %v805_v19, %v238_v2  ;;  %v392_v1 = vadd.s32 %v893_v54, %v889_v44 }
  0xa5   : > { %v323_v6 = vsub.f32 %v808_v20, %v312_v4 }
  0xa6   : > { %v852_v7 = vpop.eup %595  ;;  %v336_v8 = vmul.f32 1.442695, %v324_v3  ;;  %v259_v15 = vmul.f32 1.442695, %v247_v9  ;;  %v387_v9 = vadd.s32 32, %v889_v44  ;;  %vm399_vm2 = vcmp.lt.s32.totalorder %v392_v1, 100 }
  0xa7   : > { %v855_v10 = vpop.eup %597  ;;  %v334_v11 = vmul.f32 1.442695, %v323_v6  ;;  %v275_v12 = vsel %vm220_vm0, %v852_v7, 0.0 }
  0xa8   : > { %601 = vpow2.f32 %v336_v8  ;;  %v272_v13 = vsel %vm220_vm0, %v855_v10, 0.0  ;;  %v863_v17 = vpop.eup %599 }
  0xa9   : > { %603 = vpow2.f32 %v334_v11  ;;  %276 = vadd.xlane.f32.xlu1 %v275_v12  ;;  %273 = vadd.xlane.f32.xlu2 %v272_v13  ;;  %v349_v27 = vsel %vm220_vm0, %v863_v17, 0.0 }
  0xaa   : > { %270 = vadd.xlane.f32.xlu0 %v269_v14  ;;  %605 = vpow2.f32 %v259_v15 }
  0xab   : > { %v318_v16 = vpop.xlane.xlu1 %317 }
  0xac   : > { %v241_v18 = vpop.xlane.xlu0 %240  ;;  %v325_v21 = vsub.f32 %v817_v24, %v318_v16 }
  0xad   : > { %v248_v19 = vsub.f32 %v820_v25, %v241_v18 }
  0xae   : > { %v866_v20 = vpop.eup %601  ;;  %v338_v25 = vmul.f32 1.442695, %v325_v21  ;;  %v396_v21 = vadd.s32 %v893_v54, %v387_v9 }
  0xaf   : > { %v869_v22 = vpop.eup %603  ;;  %v261_v23 = vmul.f32 1.442695, %v248_v19  ;;  %v355_v26 = vsel %vm220_vm0, %v866_v20, 0.0 }
  0xb0   : > { %v352_v28 = vsel %vm220_vm0, %v869_v22, 0.0  ;;  %v877_v29 = vpop.eup %605  ;;  %vm403_vm5 = vcmp.lt.s32.totalorder %v396_v21, 100 }
  0xb1   : > { %607 = vpow2.f32 %v261_v23  ;;  %356 = vadd.xlane.f32.xlu1 %v355_v26  ;;  %353 = vadd.xlane.f32.xlu2 %v352_v28  ;;  %v278_v30 = vsel %vm220_vm0, %v877_v29, 0.0 }
  0xb2   : > { %350 = vadd.xlane.f32.xlu0 %v349_v27  ;;  %609 = vpow2.f32 %v338_v25 }
  0xb7   : > { %v879_v24 = vpop.eup %607 }
  0xb8   : > { %v281_v31 = vsel %vm220_vm0, %v879_v24, 0.0  ;;  %v885_v32 = vpop.eup %609 }
  0xb9   : > { %282 = vadd.xlane.f32.xlu2 %v281_v31  ;;  %v358_v33 = vsel %vm220_vm0, %v885_v32, 0.0 }
  0xba   : > { %279 = vadd.xlane.f32.xlu0 %v278_v30 }
  0xc2   : > { %359 = vadd.xlane.f32.xlu0 %v358_v33 }
 0x10b   : > { %v342_v34 = vpop.xlane.xlu1 %341 }
 0x10c   : > { %v265_v35 = vpop.xlane.xlu2 %264 }
 0x114   : > { %v345_v36 = vpop.xlane.xlu2 %344  ;;  %v348_v38 = vpop.xlane.xlu1 %347 }
 0x115   : > { %v268_v37 = vpop.xlane.xlu0 %267  ;;  %611 = vrcp.f32 %v345_v36 }
 0x116   : > { %613 = vrcp.f32 %v268_v37 }
 0x117   : > { %615 = vrcp.f32 %v342_v34 }
 0x118   : > { %617 = vrcp.f32 %v265_v35 }
 0x11b   : > { %v612_v45 = vpop.eup %611 }
 0x11c   : > { %v274_v40 = vpop.xlane.xlu2 %273  ;;  %v277_v43 = vpop.xlane.xlu1 %276  ;;  %v369_v56 = vmul.f32 %v612_v45, %v835_v55 }
 0x11d   : > { %v271_v42 = vpop.xlane.xlu0 %270  ;;  %v614_v46 = vpop.eup %613 }
 0x11e   : > { %619 = vrcp.f32 %v271_v42  ;;  %v616_v49 = vpop.eup %615  ;;  %v292_v57 = vmul.f32 %v614_v46, %v842_v61  ;;  %v394_v61 = vadd.s32 %v893_v54, %v385_v59 }
 0x11f   : > { %621 = vrcp.f32 %v348_v38  ;;  %v618_v50 = vpop.eup %617  ;;  %v368_v0 = vmul.f32 %v616_v49, %v826_v41  ;;  %v395_v41 = vadd.s32 %v893_v54, %v386_v63  ;;  %v389_v38 = vadd.s32 48, %v889_v44 }
 0x120   : > { %623 = vrcp.f32 %v274_v40  ;;  %v291_v2 = vmul.f32 %v618_v50, %v831_v47  ;;  %v376_v3 = vsub.f32 %v292_v57, %v369_v56  ;;  %vm401_vm3 = vcmp.lt.s32.totalorder %v394_v61, 100 }
 0x121   : > { %vm402_vm4 = vcmp.lt.s32.totalorder %v395_v41, 100 }
 0x122   : > { %v375_v12 = vsub.f32 %v291_v2, %v368_v0  ;;  %v407_v14 = vsel %vm400_vm1, %v376_v3, 0.0 }
 0x123   : > { %v414_v26 = vmul.f32 %v407_v14, %v407_v14 }
 0x124   : > { %v354_v51 = vpop.xlane.xlu2 %353  ;;  %v620_v53 = vpop.eup %619  ;;  %v406_v23 = vsel %vm399_vm2, %v375_v12, 0.0 }
 0x125   : > { %v351_v52 = vpop.xlane.xlu0 %350  ;;  %v622_v62 = vpop.eup %621  ;;  %v293_v55 = vmul.f32 %v620_v53, %v849_v5  ;;  %v413_v33 = vmul.f32 %v406_v23, %v406_v23  ;;  %v421_v39 = vsel %vm220_vm0, %v414_v26, 0.0 }
 0x126   : > { %625 = vrcp.f32 %v351_v52  ;;  %v357_v4 = vpop.xlane.xlu1 %356  ;;  %v624_v6 = vpop.eup %623  ;;  %v370_v8 = vmul.f32 %v622_v62, %v838_v58  ;;  %v388_v58 = vadd.s32 40, %v889_v44  ;;  %v398_v44 = vadd.s32 %v893_v54, %v389_v38 }
 0x127   : > { %627 = vrcp.f32 %v354_v51  ;;  %v294_v15 = vmul.f32 %v624_v6, %v855_v10 }
 0x128   : > { %629 = vrcp.f32 %v277_v43  ;;  %v377_v13 = vsub.f32 %v293_v55, %v370_v8  ;;  %v420_v43 = vsel %vm220_vm0, %v413_v33, 0.0  ;;  %vm405_vm7 = vcmp.lt.s32.totalorder %v398_v44, 100 }
 0x129   : > { %631 = vrcp.f32 %v357_v4  ;;  %v422_v48 = vadd.f32 %v421_v39, %v420_v43 }
 0x12a   : > { %v408_v27 = vsel %vm401_vm3, %v377_v13, 0.0 }
 0x12b   : > { %v415_v34 = vmul.f32 %v408_v27, %v408_v27 }
 0x12c   : > { %v626_v11 = vpop.eup %625  ;;  %v283_v25 = vpop.xlane.xlu2 %282 }
 0x12d   : > { %v280_v47 = vpop.xlane.xlu0 %279  ;;  %v628_v5 = vpop.eup %627  ;;  %v371_v16 = vmul.f32 %v626_v11, %v863_v17  ;;  %v397_v17 = vadd.s32 %v893_v54, %v388_v58  ;;  %v423_v45 = vsel %vm220_vm0, %v415_v34, 0.0 }
 0x12e   : > { %633 = vrcp.f32 %v280_v47  ;;  %v630_v18 = vpop.eup %629  ;;  %v372_v28 = vmul.f32 %v628_v5, %v869_v22  ;;  %v424_v52 = vadd.f32 %v423_v45, %v422_v48 }
 0x12f   : > { %v378_v19 = vsub.f32 %v294_v15, %v371_v16  ;;  %v632_v30 = vpop.eup %631  ;;  %v295_v10 = vmul.f32 %v630_v18, %v852_v7  ;;  %635 = vrcp.f32 %v283_v25  ;;  %vm404_vm6 = vcmp.lt.s32.totalorder %v397_v17, 100 }
 0x130   : > { %v373_v22 = vmul.f32 %v632_v30, %v866_v20 }
 0x131   : > { %v409_v31 = vsel %vm402_vm4, %v378_v19, 0.0  ;;  %v379_v36 = vsub.f32 %v295_v10, %v372_v28 }
 0x132   : > { %v416_v7 = vmul.f32 %v409_v31, %v409_v31 }
 0x133   : > { %v410_v46 = vsel %vm403_vm5, %v379_v36, 0.0 }
 0x134   : > { %v634_v35 = vpop.eup %633  ;;  %v425_v51 = vsel %vm220_vm0, %v416_v7, 0.0  ;;  %v417_v53 = vmul.f32 %v410_v46, %v410_v46 }
 0x135   : > { %v360_v37 = vpop.xlane.xlu0 %359  ;;  %v296_v40 = vmul.f32 %v634_v35, %v877_v29  ;;  %v636_v49 = vpop.eup %635  ;;  %v426_v59 = vadd.f32 %v425_v51, %v424_v52 }
 0x136   : > { %637 = vrcp.f32 %v360_v37  ;;  %v297_v56 = vmul.f32 %v636_v49, %v879_v24  ;;  %v427_v62 = vsel %vm220_vm0, %v417_v53, 0.0 }
 0x137   : > { %v380_v42 = vsub.f32 %v296_v40, %v373_v22  ;;  %v428_v0 = vadd.f32 %v427_v62, %v426_v59 }
 0x139   : > { %v411_v50 = vsel %vm404_vm6, %v380_v42, 0.0 }
 0x13a   : > { %v418_v29 = vmul.f32 %v411_v50, %v411_v50 }
 0x13c   : > { %v638_v20 = vpop.eup %637  ;;  %v429_v63 = vsel %vm220_vm0, %v418_v29, 0.0 }
 0x13d   : > { %v374_v57 = vmul.f32 %v638_v20, %v885_v32  ;;  %v430_v2 = vadd.f32 %v429_v63, %v428_v0 }
 0x13f   : > { %v381_v60 = vsub.f32 %v297_v56, %v374_v57 }
 0x141   : > { %v412_v54 = vsel %vm405_vm7, %v381_v60, 0.0 }
 0x142   : > { %v419_v1 = vmul.f32 %v412_v54, %v412_v54 }
 0x144   : > { %v431_v55 = vsel %vm220_vm0, %v419_v1, 0.0 }
 0x145   : > { %v432_v3 = vadd.f32 %v431_v55, %v430_v2 }
 0x147   : > { %433 = vadd.xlane.f32.xlu1 %v432_v3 }
 0x1ba   : > { %v434_v24 = vpop.xlane.xlu1 %433 }
 0x1bb   : > { %v435_v61 = vrot.slane %v434_v24, 4 }
 0x1bd   : > { %v436_v32 = vadd.f32 %v435_v61, %v434_v24 }
 0x1bf   : > { %v437_v4 = vrot.slane %v436_v32, 2 }
 0x1c1   : > { %v438_v6 = vadd.f32 %v437_v4, %v436_v32 }
 0x1c3   : > { %v439_v8 = vrot.slane %v438_v6, 1 }
 0x1c5   : > { %v440_v9 = vadd.f32 %v439_v8, %v438_v6 }
 0x1c7   : > { %542 = vpush %v440_v9 }
 0x1f8   : > { %s543_s17 = spop %542 }
 0x1f9   : > { %v442_v41 = vstv %s543_s17 }
 0x1fa   : > { %443 = vst [vmem:[%s177_s8] sm:$0xff] %v442_v41 }
 0x1fb   : > { %666 = shalt.err (!%p663_p3)
}
 0x1fc   : > { %544 = dma.vmem_to_hbm [thread:$0]  (%p756_p5), %s458_s14, 128, %s460_s16, %s445_s21  }
 0x1fd PF: > { %p550_p4 = scmp.ge.s32.totalorder %s701_s12, 2  ;;  %s471_s28 = sand.u32 1, %s689_s9  }
 0x1fe   : > { %s472_s29 = scalar_lea.sflag [#allocation3], %s471_s28 }
 0x1ff   : > { %p547_p7 = pnand %p550_p4, %p760_p6 }
 0x201   : > { %p548_p8 = pneg %p547_p7 }
 0x203   : > { %684 = dma.done.wait (%p548_p8), %s472_s29, 128  }
 0x204   : > { %686 = vsyncadd (%p548_p8), %s472_s29, 4294967168  ;;  %p12_p9 = scmp.ge.s32.totalorder %s743_s15, 4   ;;  %s967_s9 = smov %s693_s10 }
 0x205   : > { %s968_s10 = smov %s697_s11  ;;  %s969_s11 = smov %s754_s18 }
 0x206   : > { %s970_s12 = smov %s743_s15  ;;  %14 = sbr.rel (!%p12_p9) target bundleno = 3 (0x3), region = 66 }
 0x20b   :  { %478 = vsyncpa [#allocation3], 1 }
 0x20c   :  { %480 = vsyncpa [#allocation3 + $0x1], 1 }

</bundles_post_ra>
